<compile_context>
chip_gen: v7x
topology: tpu7x:2x2x1
jax: 0.10.0
libtpu: 0.0.40
codegen_flags: <defaults>
</compile_context>

<pallas_src>
import functools

import jax
import jax.numpy as jnp
from jax.experimental import pallas as pl
from jax.experimental.pallas import tpu as pltpu


_CHUNK = 512  # lane width of one inner sub-chunk (multiple of 128)


def mlp_kernel(x_ref, w1_ref, b1_ref, w2_ref, b2_ref, w3_ref, b3_ref, ot_ref,
               *, chunk, n_chunks):
    """One batch tile of the fused MLP.

      x_ref  : (TB, In) f32   activations, native PyTorch layout
      w1_ref : (H, In)  bf16  nn.Linear (out, in) layout
      b1_ref : (H, 1)   f32
      w2_ref : (H, H)   bf16
      b2_ref : (H, 1)   f32
      w3_ref : (H, 1)   bf16  fc3 weight as a column
      b3_ref : (1, 1)   f32   SMEM scalar
      ot_ref : (1, TB)  f32   lane-dense output row, TB = chunk * n_chunks
    """
    # Loop-invariant loads / casts / broadcasts, hoisted out of the chunk loop.
    w1 = w1_ref[...]                                   # (H, In) bf16
    w2 = w2_ref[...]                                   # (H, H)  bf16
    w3 = w3_ref[...].astype(jnp.float32)               # (H, 1)  f32
    b3 = b3_ref[0, 0]                                  # scalar  f32 (SMEM)
    H = w1.shape[0]
    b1b = jnp.broadcast_to(b1_ref[...], (H, chunk))    # lane-broadcast once
    b2b = jnp.broadcast_to(b2_ref[...], (H, chunk))

    def compute_chunk(off):
        xc = x_ref[pl.ds(off, chunk), :].astype(w1.dtype)        # (chunk, In) bf16
        # fc1 + ReLU: contract the In dims of (H, In) and (chunk, In) on the MXU
        # -> (H, chunk) with the batch on lanes; f32 accumulation.
        h = jax.lax.dot_general(w1, xc, (((1,), (1,)), ((), ())),
                                preferred_element_type=jnp.float32)
        h = jnp.maximum(h + b1b, 0.0)
        # fc2 + ReLU: (H, H) @ (H, chunk) on the MXU, f32 accumulation.
        h = jax.lax.dot_general(w2, h.astype(w2.dtype), (((1,), (0,)), ((), ())),
                                preferred_element_type=jnp.float32)
        h = jnp.maximum(h + b2b, 0.0)
        # fc3: single output feature -> VPU multiply + sublane reduction instead
        # of an N=1 MXU matmul (avoids a 99%-padded MXU tile).
        y = jnp.sum(h * w3, axis=0, keepdims=True) + b3          # (1, chunk)
        ot_ref[:, pl.ds(off, chunk)] = y.astype(ot_ref.dtype)

    if n_chunks == 1:
        compute_chunk(0)                                         # static slice
    else:
        def body(c, carry):
            compute_chunk(pl.multiple_of(c * chunk, chunk))
            return carry
        jax.lax.fori_loop(0, n_chunks, body, 0, unroll=True)


def _round_up(x, m):
    return ((x + m - 1) // m) * m


def _choose_tiling(batch):
    """Pick (TB, chunk, n_chunks) for the batch grid."""
    if batch <= 128:
        tb = 128            # tiny batch: one lane-padded 128 tile
    elif batch <= 512:
        tb = 256            # multiple of 256; >= 2 grid steps once B > 256
    else:
        # Big tile (amortizes per-grid-step overhead), capped at ceil(B/2) so the
        # parallel batch axis always has >= 2 grid steps (v7x 2 TCs), and at 4096.
        tb = min(4096, _round_up((batch + 1) // 2, _CHUNK))
    chunk = min(tb, _CHUNK)
    return tb, chunk, tb // chunk


def mlp_forward(x, w1, b1, w2, b2, w3, b3):
    """x: (B, input_size) f32 -> (B, 1) f32."""
    B, In = x.shape
    H = w1.shape[0]

    TB, chunk, n_chunks = _choose_tiling(B)
    num_tiles = pl.cdiv(B, TB)
    padded_B = num_tiles * TB
    if padded_B != B:                                  # zero row-pad only
        x = jnp.pad(x, ((0, padded_B - B), (0, 0)))

    const = lambda shape: pl.BlockSpec(shape, lambda i: (0, 0))
    kernel = functools.partial(mlp_kernel, chunk=chunk, n_chunks=n_chunks)

    out_t = pl.pallas_call(
        kernel,
        out_shape=jax.ShapeDtypeStruct((1, padded_B), jnp.float32),
        grid_spec=pltpu.PrefetchScalarGridSpec(
            num_scalar_prefetch=0,
            grid=(num_tiles,),
            in_specs=[
                pl.BlockSpec((TB, In), lambda i: (i, 0)),            # x, native layout
                const((H, In)),                                      # W1 (VMEM resident)
                const((H, 1)),                                       # b1
                const((H, H)),                                       # W2 (VMEM resident)
                const((H, 1)),                                       # b2
                const((H, 1)),                                       # w3 column
                pl.BlockSpec(memory_space=pltpu.MemorySpace.SMEM),   # b3 scalar
            ],
            out_specs=pl.BlockSpec((1, TB), lambda i: (0, i)),
        ),
        compiler_params=pltpu.CompilerParams(
            dimension_semantics=("parallel",),
        ),
    )(x, w1, b1, w2, b2, w3, b3)

    return jnp.transpose(out_t[:, :B])                               # (B, 1)


def init_params(key, input_size, hidden_size, compute_dtype=jnp.bfloat16):
    """PyTorch nn.Linear default init: U(-1/sqrt(fan_in), 1/sqrt(fan_in)).

    Weights kept in PyTorch (out_features, in_features) layout, cast to bf16;
    biases stored as f32 columns (out, 1); fc3 weight as a (H, 1) column and
    its bias as a (1, 1) scalar for SMEM.
    """
    def linear(k, fan_in, fan_out):
        kw, kb = jax.random.split(k)
        bound = 1.0 / float(fan_in) ** 0.5
        w = jax.random.uniform(kw, (fan_out, fan_in), jnp.float32, -bound, bound)
        b = jax.random.uniform(kb, (fan_out, 1), jnp.float32, -bound, bound)
        return w, b

    k1, k2, k3 = jax.random.split(key, 3)
    w1, b1 = linear(k1, input_size, hidden_size)     # (H, In), (H, 1)
    w2, b2 = linear(k2, hidden_size, hidden_size)    # (H, H),  (H, 1)
    w3_row, b3 = linear(k3, hidden_size, 1)          # (1, H),  (1, 1)
    return (w1.astype(compute_dtype), b1,
            w2.astype(compute_dtype), b2,
            jnp.transpose(w3_row).astype(compute_dtype), b3)


def mlp_reference(x, w1, b1, w2, b2, w3, b3):
    """Plain-JAX f32 reference matching PyTorch MLP.forward."""
    w1f, w2f, w3f = (w.astype(jnp.float32) for w in (w1, w2, w3))
    h = jnp.maximum(x @ w1f.T + b1[:, 0], 0.0)
    h = jnp.maximum(h @ w2f.T + b2[:, 0], 0.0)
    return h @ w3f + b3[0, 0]


if __name__ == "__main__":
    input_size, hidden_size, batch = 16, 32, 8

    key = jax.random.PRNGKey(0)
    kx, kp = jax.random.split(key)
    x = jax.random.normal(kx, (batch, input_size), jnp.float32)
    params = init_params(kp, input_size, hidden_size)

    out = mlp_forward(x, *params)
    jax.block_until_ready(out)
    assert out.shape == (batch, 1)
    # bf16 weights/activations (f32 accumulation) -> loosened tolerance vs f32 ref.
    assert jnp.allclose(out, mlp_reference(x, *params), atol=5e-2, rtol=5e-2)

    # Multi-tile grid with batch padding (TB=256, 2 grid steps).
    x2 = jax.random.normal(jax.random.PRNGKey(1), (300, input_size), jnp.float32)
    out2 = mlp_forward(x2, *params)
    jax.block_until_ready(out2)
    assert out2.shape == (300, 1)
    assert jnp.allclose(out2, mlp_reference(x2, *params), atol=5e-2, rtol=5e-2)

    # Large batch: exercises the big tile + unrolled 512-lane inner chunk loop.
    x3 = jax.random.normal(jax.random.PRNGKey(2), (1100, input_size), jnp.float32)
    out3 = mlp_forward(x3, *params)
    jax.block_until_ready(out3)
    assert out3.shape == (1100, 1)
    assert jnp.allclose(out3, mlp_reference(x3, *params), atol=5e-2, rtol=5e-2)

    print("KERNEL_OK")
</pallas_src>

<mosaic_0001>
module attributes {stable_mosaic.version = 11 : i64} {
  func.func @mlp_kernel(%arg0: i32, %arg1: memref<128x16xf32, #tpu.memory_space<vmem>>, %arg2: memref<32x16xbf16, #tpu.memory_space<vmem>>, %arg3: memref<32x1xf32, #tpu.memory_space<vmem>>, %arg4: memref<32x32xbf16, #tpu.memory_space<vmem>>, %arg5: memref<32x1xf32, #tpu.memory_space<vmem>>, %arg6: memref<32x1xbf16, #tpu.memory_space<vmem>>, %arg7: memref<1x1xf32, #tpu.memory_space<smem>>, %arg8: memref<1x128xf32, #tpu.memory_space<vmem>>) attributes {dimension_semantics = [#tpu.dimension_semantics<parallel>], iteration_bounds = array<i64: 1>, scalar_prefetch = 0 : i64, scratch_operands = 0 : i64, tpu.core_type = #tpu.core_type<tc>, window_params = [{transform_indices = @transform_0, window_bounds = array<i64: 128, 16>}, {pipeline_mode = #tpu.pipeline_mode<synchronous>, transform_indices = @transform_1, window_bounds = array<i64: 32, 16>}, {pipeline_mode = #tpu.pipeline_mode<synchronous>, transform_indices = @transform_2, window_bounds = array<i64: 32, 1>}, {pipeline_mode = #tpu.pipeline_mode<synchronous>, transform_indices = @transform_3, window_bounds = array<i64: 32, 32>}, {pipeline_mode = #tpu.pipeline_mode<synchronous>, transform_indices = @transform_4, window_bounds = array<i64: 32, 1>}, {pipeline_mode = #tpu.pipeline_mode<synchronous>, transform_indices = @transform_5, window_bounds = array<i64: 32, 1>}, {transform_indices = @transform_6, window_bounds = array<i64: 1, 1>}, {transform_indices = @transform_7, window_bounds = array<i64: 1, 128>}]} {
    %c0 = arith.constant 0 : index
    %c0_0 = arith.constant 0 : index
    %0 = vector.load %arg2[%c0, %c0_0] : memref<32x16xbf16, #tpu.memory_space<vmem>>, vector<32x16xbf16>
    %c0_1 = arith.constant 0 : index
    %c0_2 = arith.constant 0 : index
    %1 = vector.load %arg4[%c0_1, %c0_2] : memref<32x32xbf16, #tpu.memory_space<vmem>>, vector<32x32xbf16>
    %c0_3 = arith.constant 0 : index
    %c0_4 = arith.constant 0 : index
    %2 = vector.load %arg6[%c0_3, %c0_4] : memref<32x1xbf16, #tpu.memory_space<vmem>>, vector<32x1xbf16>
    %3 = arith.extf %2 : vector<32x1xbf16> to vector<32x1xf32>
    %c0_5 = arith.constant 0 : index
    %c0_6 = arith.constant 0 : index
    %4 = memref.load %arg7[%c0_5, %c0_6] : memref<1x1xf32, #tpu.memory_space<smem>>
    %c0_7 = arith.constant 0 : index
    %c0_8 = arith.constant 0 : index
    %5 = vector.load %arg3[%c0_7, %c0_8] : memref<32x1xf32, #tpu.memory_space<vmem>>, vector<32x1xf32>
    %6 = vector.shape_cast %5 : vector<32x1xf32> to vector<32x1xf32>
    %7 = vector.broadcast %6 : vector<32x1xf32> to vector<32x128xf32>
    %c0_9 = arith.constant 0 : index
    %c0_10 = arith.constant 0 : index
    %8 = vector.load %arg5[%c0_9, %c0_10] : memref<32x1xf32, #tpu.memory_space<vmem>>, vector<32x1xf32>
    %9 = vector.shape_cast %8 : vector<32x1xf32> to vector<32x1xf32>
    %10 = vector.broadcast %9 : vector<32x1xf32> to vector<32x128xf32>
    %c0_11 = arith.constant 0 : index
    %c0_12 = arith.constant 0 : index
    %11 = vector.load %arg1[%c0_11, %c0_12] : memref<128x16xf32, #tpu.memory_space<vmem>>, vector<128x16xf32>
    %12 = arith.truncf %11 : vector<128x16xf32> to vector<128x16xbf16>
    %cst = arith.constant dense<0.000000e+00> : vector<32x128xf32>
    %13 = tpu.matmul %0, %12, %cst {dimension_numbers = #tpu.dot_dimension_numbers<[1], [1], [0], [0], [0, 0, 1, 0], [], []>} : vector<32x16xbf16>, vector<128x16xbf16>, vector<32x128xf32> -> vector<32x128xf32>
    %14 = arith.addf %13, %7 : vector<32x128xf32>
    %cst_13 = arith.constant 0.000000e+00 : f32
    %15 = vector.broadcast %cst_13 : f32 to vector<32x128xf32>
    %16 = arith.maximumf %14, %15 : vector<32x128xf32>
    %17 = arith.truncf %16 : vector<32x128xf32> to vector<32x128xbf16>
    %cst_14 = arith.constant dense<0.000000e+00> : vector<32x128xf32>
    %18 = tpu.matmul %1, %17, %cst_14 {dimension_numbers = #tpu.dot_dimension_numbers<[1], [0], [0], [1], [0, 0, 1, 1], [], []>} : vector<32x32xbf16>, vector<32x128xbf16>, vector<32x128xf32> -> vector<32x128xf32>
    %19 = arith.addf %18, %10 : vector<32x128xf32>
    %cst_15 = arith.constant 0.000000e+00 : f32
    %20 = vector.broadcast %cst_15 : f32 to vector<32x128xf32>
    %21 = arith.maximumf %19, %20 : vector<32x128xf32>
    %22 = vector.broadcast %3 : vector<32x1xf32> to vector<32x128xf32>
    %23 = arith.mulf %21, %22 : vector<32x128xf32>
    %cst_16 = arith.constant dense<0.000000e+00> : vector<128xf32>
    %24 = vector.multi_reduction <add>, %23, %cst_16 [0] : vector<32x128xf32> to vector<128xf32>
    %25 = vector.shape_cast %24 : vector<128xf32> to vector<1x128xf32>
    %26 = vector.broadcast %4 : f32 to vector<1x128xf32>
    %27 = arith.addf %25, %26 : vector<1x128xf32>
    %c0_17 = arith.constant 0 : index
    %c0_18 = arith.constant 0 : index
    %28 = vector.load %arg8[%c0_17, %c0_18] : memref<1x128xf32, #tpu.memory_space<vmem>>, vector<1x128xf32>
    tpu.vector_store %arg8[%c0_17, %c0_18], %27 {strides = array<i32>} : memref<1x128xf32, #tpu.memory_space<vmem>>, vector<1x128xf32>,
    return
  }
  func.func @transform_0(%arg0: i32) -> (i32, i32) {
    %c0_i32 = arith.constant 0 : i32
    %c0_i32_0 = arith.constant 0 : i32
    return %arg0, %c0_i32 : i32, i32
  }
  func.func @transform_1(%arg0: i32) -> (i32, i32) {
    %c0_i32 = arith.constant 0 : i32
    %c0_i32_0 = arith.constant 0 : i32
    %c0_i32_1 = arith.constant 0 : i32
    return %c0_i32, %c0_i32_0 : i32, i32
  }
  func.func @transform_2(%arg0: i32) -> (i32, i32) {
    %c0_i32 = arith.constant 0 : i32
    %c0_i32_0 = arith.constant 0 : i32
    %c0_i32_1 = arith.constant 0 : i32
    return %c0_i32, %c0_i32_0 : i32, i32
  }
  func.func @transform_3(%arg0: i32) -> (i32, i32) {
    %c0_i32 = arith.constant 0 : i32
    %c0_i32_0 = arith.constant 0 : i32
    %c0_i32_1 = arith.constant 0 : i32
    return %c0_i32, %c0_i32_0 : i32, i32
  }
  func.func @transform_4(%arg0: i32) -> (i32, i32) {
    %c0_i32 = arith.constant 0 : i32
    %c0_i32_0 = arith.constant 0 : i32
    %c0_i32_1 = arith.constant 0 : i32
    return %c0_i32, %c0_i32_0 : i32, i32
  }
  func.func @transform_5(%arg0: i32) -> (i32, i32) {
    %c0_i32 = arith.constant 0 : i32
    %c0_i32_0 = arith.constant 0 : i32
    %c0_i32_1 = arith.constant 0 : i32
    return %c0_i32, %c0_i32_0 : i32, i32
  }
  func.func @transform_6(%arg0: i32) -> (i32, i32) {
    %c0_i32 = arith.constant 0 : i32
    %c0_i32_0 = arith.constant 0 : i32
    %c0_i32_1 = arith.constant 0 : i32
    return %c0_i32, %c0_i32_0 : i32, i32
  }
  func.func @transform_7(%arg0: i32) -> (i32, i32) {
    %c0_i32 = arith.constant 0 : i32
    %c0_i32_0 = arith.constant 0 : i32
    return %c0_i32, %arg0 : i32, i32
  }
}

</mosaic_0001>

<bundles_post_ra>
// kernel: tpu_custom_call.1
= control target key start
LH: loop header
LB: loop body
LE: loop exit
PB: predicated region body
PF: predicated region fallthrough
CT: control target
= control target key end

     0   :  { %vm128_vm0 = vcmask 130048   ;;  %v438_v5 = vmov 0   ;;  %s605_s0 = inlined_call_operand.vmem [shape: f32[128,16], index: 0, kind: input, shape index: {}]   ;;  %s606_s1 = inlined_call_operand.vmem [shape: bf16[32,16], index: 1, kind: input, shape index: {}]   ;;  %s607_s2 = inlined_call_operand.vmem [shape: f32[32,1], index: 2, kind: input, shape index: {}]   ;;  %s608_s3 = inlined_call_operand.vmem [shape: bf16[32,32], index: 3, kind: input, shape index: {}]   ;;  %s609_s4 = inlined_call_operand.vmem [shape: f32[32,1], index: 4, kind: input, shape index: {}]   ;;  %s610_s5 = inlined_call_operand.vmem [shape: bf16[32,1], index: 5, kind: input, shape index: {}]   ;;  %s611_s6 = inlined_call_operand.<no memory space> [shape: f32[1,1], index: 6, kind: input, shape index: {}]   ;;  %s612_s7 = inlined_call_operand.hbm [shape: f32[1,128], index: 7, kind: output, shape index: {}]  }
   0x1   :  { %v94_v0 = vld [vmem:[%s605_s0] sm:$0xff]  ;;  %v95_v1 = vld [vmem:[%s605_s0 + $0x8] sm:$0xff]  ;;  %v96_v2 = vld [vmem:[%s605_s0 + $0x10] sm:$0xff]  ;;  %403 = vset.pattern.permute.xlu0 %v438_v5  ;;  %404 = vset.pattern.permute.xlu1 %v438_v5 }
   0x2   :  { %v110_v3 = vpack.c.bf16 %v95_v1, %v94_v0  ;;  %v97_v4 = vld [vmem:[%s605_s0 + $0x18] sm:$0xff]  ;;  %v98_v8 = vld [vmem:[%s605_s0 + $0x20] sm:$0xff]  ;;  %v99_v9 = vld [vmem:[%s605_s0 + $0x28] sm:$0xff] }
   0x3   :  { %v111_v6 = vpack.c.bf16 %v97_v4, %v96_v2  ;;  %v410_v10 = vld [vmem:[%s606_s1] sm:$0xff]   ;;  %v48_v12 = vld [vmem:[%s607_s2 + $0x10] sm:$0xff]  ;;  %v112_v14 = vpack.c.bf16 %v99_v9, %v98_v8  ;;  %v47_v15 = vld [vmem:[%s607_s2 + $0x8] sm:$0xff] }
   0x4   :  { %393 = vmatprep.subr.msk.bf16.mxu0 %vm128_vm0, %v110_v3  ;;  %v136_v7 = vsel %vm128_vm0, %v110_v3, 0  ;;  %v46_v11 = vld [vmem:[%s607_s2] sm:$0xff]  ;;  %381 = vmatprep.mubr.msk.bf16.mxu0 %vm128_vm0, %v410_v10  ;;  %v49_v16 = vld [vmem:[%s607_s2 + $0x18] sm:$0xff] }
   0x5   :  { %366 = vmatpush3.bf16.xpose.msra.mxu0 %v136_v7  ;;  %52 = vperm.xlu0 %403, %v46_v11   ;;  %v139_v13 = vsel %vm128_vm0, %v111_v6, 0 }
   0x6   :  { %394 = vmatprep.subr.msk.bf16.mxu0 %vm128_vm0, %v111_v6  ;;  %62 = vperm.xlu1 %404, %v48_v12  }
   0x9   :  { %57 = vperm.xlu0 %403, %v47_v15  }
   0xd   :  { %368 = vmatpush3.bf16.xpose.msra.mxu0 %v139_v13 }
   0xe   :  { %13 = vsyncpa [#allocation4], 0  ;;  %395 = vmatprep.subr.msk.bf16.mxu0 %vm128_vm0, %v112_v14  ;;  %v70_v17 = vld [vmem:[%s609_s4] sm:$0xff]  ;;  %67 = vperm.xlu1 %404, %v49_v16   ;;  %v100_v19 = vld [vmem:[%s605_s0 + $0x30] sm:$0xff]  ;;  %v142_v24 = vsel %vm128_vm0, %v112_v14, 0  ;;  %vm224_vm1 = vcmask 261120  }
   0xf   :  { %v343_v18 = vld [vmem:[%s610_s5] sm:$0xff]   ;;  %v101_v20 = vld [vmem:[%s605_s0 + $0x38] sm:$0xff]  ;;  %v71_v21 = vld [vmem:[%s609_s4 + $0x8] sm:$0xff]  ;;  %76 = vperm.xlu0 %403, %v70_v17   ;;  %s439_s10 = smov [#allocation3]  }
  0x10   :  { %v344_v22 = vunpack.c.l.bf16 %v343_v18  ;;  %v345_v23 = vunpack.c.h.bf16 %v343_v18  ;;  %v113_v25 = vpack.c.bf16 %v101_v20, %v100_v19  ;;  %v72_v26 = vld [vmem:[%s609_s4 + $0x10] sm:$0xff]  ;;  %v73_v27 = vld [vmem:[%s609_s4 + $0x18] sm:$0xff]  ;;  %v350_v29 = vld [vmem:[%s610_s5 + $0x8] sm:$0xff]   ;;  %s326_s11 = sshll.u32 %s439_s10, 4  ;;  %s327_s11 = int_to_ptr.vmem [resolvable:$true] %s326_s11 }
  0x11   :  { %v348_v30 = vunpack.c.l.bf16 %v350_v29  ;;  %v102_v31 = vld [vmem:[%s605_s0 + $0x40] sm:$0xff]  ;;  %v103_v32 = vld [vmem:[%s605_s0 + $0x48] sm:$0xff]  ;;  %v349_v33 = vunpack.c.h.bf16 %v350_v29  ;;  %v104_v36 = vld [vmem:[%s605_s0 + $0x50] sm:$0xff]  ;;  %s414_s12 = scalar_lea.vmem %s327_s11, 16  ;;  %s418_s13 = scalar_lea.vmem %s327_s11, 32 }
  0x12   :  { %81 = vperm.xlu1 %404, %v71_v21   ;;  %v405_v28 = vpack.i.bf16 %v345_v23, %v344_v22  ;;  %v145_v34 = vsel %vm128_vm0, %v113_v25, 0  ;;  %v114_v35 = vpack.c.bf16 %v103_v32, %v102_v31  ;;  %v105_v37 = vld [vmem:[%s605_s0 + $0x58] sm:$0xff]  ;;  %v106_v40 = vld [vmem:[%s605_s0 + $0x60] sm:$0xff]  ;;  %v107_v41 = vld [vmem:[%s605_s0 + $0x68] sm:$0xff]  ;;  %p415_p0 = scmp.ne.s32.totalorder %s327_s11, %s414_s12  ;;  %p419_p1 = scmp.lt.s32.totalorder %s327_s11, %s327_s11 }
  0x13   :  { %86 = vperm.xlu0 %403, %v72_v26   ;;  %v115_v39 = vpack.c.bf16 %v105_v37, %v104_v36  ;;  %v116_v43 = vpack.c.bf16 %v107_v41, %v106_v40  ;;  %v108_v44 = vld [vmem:[%s605_s0 + $0x70] sm:$0xff]  ;;  %v109_v45 = vld [vmem:[%s605_s0 + $0x78] sm:$0xff]  ;;  %v411_v49 = vld [vmem:[%s606_s1 + $0x8] sm:$0xff]   ;;  %p420_p2 = scmp.lt.s32.totalorder %s418_s13, %s414_s12 }
  0x14   :  { %v148_v38 = vsel %vm128_vm0, %v114_v35, 0  ;;  %v117_v47 = vpack.c.bf16 %v109_v45, %v108_v44  ;;  %v412_v50 = vld [vmem:[%s608_s3] sm:$0xff]   ;;  %v413_v5 = vld [vmem:[%s608_s3 + $0x8] sm:$0xff]  }
  0x15   :  { %370 = vmatpush3.bf16.xpose.msra.mxu0 %v142_v24  ;;  %v151_v42 = vsel %vm128_vm0, %v115_v39, 0  ;;  %v154_v46 = vsel %vm128_vm0, %v116_v43, 0  ;;  %389 = vmatprep.mubr.msk.bf16.mxu1 %vm224_vm1, %v412_v50  ;;  %p421_p3 = por %p420_p2, %p419_p1 }
  0x16   :  { %396 = vmatprep.subr.msk.bf16.mxu0 %vm128_vm0, %v113_v25  ;;  %91 = vperm.xlu1 %404, %v73_v27   ;;  %v157_v48 = vsel %vm128_vm0, %v117_v47, 0 }
  0x17   :  { %406 = vperm.xlu0 %403, %v405_v28   ;;  %p422_p4 = pnand %p421_p3, %p415_p0 }
  0x1a   :  { %296 = vperm.xlu1 %404, %v348_v30  }
  0x1b   :  { %301 = vperm.xlu0 %403, %v349_v33  }
  0x1d   :  { %372 = vmatpush3.bf16.xpose.msra.mxu0 %v145_v34 }
  0x1e   :  { %397 = vmatprep.subr.msk.bf16.mxu0 %vm128_vm0, %v114_v35 }
  0x25   :  { %374 = vmatpush3.bf16.xpose.msra.mxu0 %v148_v38 }
  0x26   :  { %398 = vmatprep.subr.msk.bf16.mxu0 %vm128_vm0, %v115_v39  ;;  %v317_v39 = vstv %s611_s6 }
  0x2d   :  { %376 = vmatpush3.bf16.xpose.msra.mxu0 %v151_v42 }
  0x2e   :  { %399 = vmatprep.subr.msk.bf16.mxu0 %vm128_vm0, %v116_v43 }
  0x35   :  { %378 = vmatpush3.bf16.xpose.msra.mxu0 %v154_v46 }
  0x36   :  { %400 = vmatprep.subr.msk.bf16.mxu0 %vm128_vm0, %v117_v47 }
  0x3d   :  { %380 = vmatpush3.bf16.xpose.msra.mxu0 %v157_v48 }
  0x44   :  { %382 = vmatmul.mubr.msk.bf16.vlgmr.msra.gmra.mrb[0].mxu0 %vm128_vm0, %v411_v49 }
  0x84   :  { %v53_v52 = vpop.permute.xlu0 %52 }
  0x85   :  { %v63_v51 = vpop.permute.xlu1 %62 }
  0x88   :  { %v58_v59 = vpop.permute.xlu0 %57 }
  0x8d   :  { %v68_v56 = vpop.permute.xlu1 %67 }
  0x8e   :  { %v77_v6 = vpop.permute.xlu0 %76 }
  0x91   :  { %v82_v7 = vpop.permute.xlu1 %81 }
  0x92   :  { %v87_v8 = vpop.permute.xlu0 %86 }
  0x95   :  { %v92_v14 = vpop.permute.xlu1 %91 }
  0x96   :  { %v407_v19 = vpop.permute.xlu0 %406 }
  0x97   :  { %v409_v20 = vunpack.i.h.bf16 %v407_v19  ;;  %v408_v21 = vunpack.i.l.bf16 %v407_v19 }
  0x99   :  { %v297_v27 = vpop.permute.xlu1 %296 }
  0x9a   :  { %v302_v30 = vpop.permute.xlu0 %301 }
 0x117   :  { %v383_v53 = vpop.f32.mrb[0].mxu0 }
 0x118   :  { %v202_v54 = vadd.f32 %v383_v53, %v63_v51  ;;  %v193_v55 = vpop.f32.mrb[1].mxu0 }
 0x119   :  { %v194_v57 = vadd.f32 %v193_v55, %v53_v52  ;;  %v384_v58 = vpop.f32.mrb[2].mxu0 }
 0x11a   :  { %v205_v60 = vadd.f32 %v384_v58, %v68_v56  ;;  %v196_v61 = vpop.f32.mrb[3].mxu0  ;;  %v210_v63 = vmax.f32 %v202_v54, 0.0 }
 0x11b   :  { %v197_v62 = vadd.f32 %v196_v61, %v58_v59  ;;  %v208_v1 = vmax.f32 %v194_v57, 0.0 }
 0x11c   :  { %v211_v0 = vmax.f32 %v205_v60, 0.0 }
 0x11d   :  { %v209_v2 = vmax.f32 %v197_v62, 0.0 }
 0x11e   :  { %v213_v3 = vpack.c.bf16 %v211_v0, %v210_v63 }
 0x11f   :  { %v212_v4 = vpack.c.bf16 %v209_v2, %v208_v1 }
 0x121   :  { %385 = vmatprep.subr.bf16.mxu1 %v212_v4 }
 0x122   :  { %386 = vmatpush3.bf16.msra.mxu1 %v212_v4 }
 0x123   :  { %387 = vmatprep.subr.bf16.mxu1 %v213_v3 }
 0x126   :  { %388 = vmatpush3.bf16.msra.mxu1 %v213_v3 }
 0x129   :  { %390 = vmatmul.mubr.msk.bf16.vlgmr.msra.gmra.mrb[0].mxu1 %vm224_vm1, %v413_v5 }
 0x1fc   :  { %v391_v9 = vpop.f32.mrb[0].mxu1 }
 0x1fd   :  { %v265_v10 = vpop.f32.mrb[1].mxu1  ;;  %v274_v11 = vadd.f32 %v391_v9, %v87_v8 }
 0x1fe   :  { %v266_v12 = vadd.f32 %v265_v10, %v77_v6  ;;  %v392_v13 = vpop.f32.mrb[2].mxu1 }
 0x1ff   :  { %v268_v15 = vpop.f32.mrb[3].mxu1  ;;  %v277_v17 = vadd.f32 %v392_v13, %v92_v14  ;;  %v282_v22 = vmax.f32 %v274_v11, 0.0 }
 0x200   :  { %v280_v16 = vmax.f32 %v266_v12, 0.0  ;;  %v269_v18 = vadd.f32 %v268_v15, %v82_v7 }
 0x201   :  { %v283_v25 = vmax.f32 %v277_v17, 0.0  ;;  %v306_v28 = vmul.f32 %v297_v27, %v282_v22 }
 0x202   :  { %v281_v23 = vmax.f32 %v269_v18, 0.0  ;;  %v304_v24 = vmul.f32 %v408_v21, %v280_v16 }
 0x203   :  { %v307_v31 = vmul.f32 %v302_v30, %v283_v25 }
 0x204   :  { %v305_v26 = vmul.f32 %v409_v20, %v281_v23 }
 0x206   :  { %v308_v29 = vadd.f32 %v305_v26, %v304_v24 }
 0x208   :  { %v309_v32 = vadd.f32 %v308_v29, %v306_v28 }
 0x20a   :  { %v310_v33 = vadd.f32 %v309_v32, %v307_v31 }
 0x20c   :  { %v311_v34 = vrot.slane %v310_v33, 4 }
 0x20e   :  { %v312_v35 = vadd.f32 %v311_v34, %v310_v33 }
 0x210   :  { %v313_v36 = vrot.slane %v312_v35, 2 }
 0x212   :  { %v314_v37 = vadd.f32 %v313_v36, %v312_v35 }
 0x214   :  { %v315_v38 = vrot.slane %v314_v37, 1 }
 0x216   :  { %v316_v40 = vadd.f32 %v315_v38, %v314_v37 }
 0x218   :  { %v318_v41 = vadd.f32 %v317_v39, %v316_v40 }
 0x21a   :  { %319 = vst [vmem:[#allocation3] sm:$0x1] %v318_v41 }
 0x21b   :  { %425 = shalt.err (!%p422_p4)
}
 0x21c   :  { %s426_s16 = scalar_lea.hbm %s612_s7, 16 }
 0x21d   :  { %p427_p5 = scmp.ne.s32.totalorder %s612_s7, %s426_s16  ;;  %p430_p6 = scmp.lt.u32.totalorder %s426_s16, %s612_s7 }
 0x21f   :  { %p432_p7 = pnand %p430_p6, %p427_p5 }
 0x221   :  { %435 = shalt.err (!%p432_p7)
}
 0x222   :  { %329 = dma.vmem_to_hbm [thread:$0]  %s327_s11, 16, %s612_s7, [#allocation4]  }
 0x223   :  { %436 = dma.done.wait [#allocation4], 16  }
 0x224   :  { %437 = vsyncadd [#allocation4], 4294967280 }
 0x225   :  { %333 = vsyncpa [#allocation4], 1 }

</bundles_post_ra>
